<compile_context>
chip_gen: v6e
topology: v6e:2x2x1
jax: 0.10.0
libtpu: 0.0.40
codegen_flags: <defaults>
</compile_context>

<pallas_src>
import functools

import jax
import jax.numpy as jnp
from jax import lax
from jax.experimental import pallas as pl
from jax.experimental.pallas import tpu as pltpu


_SUBLANE_PACK = 32           # covers f32 (8), bf16 (16), int8/fp8 (32) sublane packing
_MAX_ROW_TILE = 2048
_TARGET_BLOCK_ELEMS = 1 << 20  # ~4 MiB per (row_tile, C) f32 temporary inside the kernel


def _round_down(x, m):
    return (x // m) * m


def _pick_row_tile(n_rows, n_cols):
    """Largest row tile that keeps the f32 working set VMEM-friendly on v5e/v6e/v7x."""
    rt = max(1, _TARGET_BLOCK_ELEMS // max(n_cols, 1))
    rt = max(_SUBLANE_PACK, min(_MAX_ROW_TILE, _round_down(rt, _SUBLANE_PACK)))
    if n_rows <= rt:
        # Single block whose shape equals the full array dims -- always a legal BlockSpec.
        return n_rows
    return rt


def _gce_kernel(logits_ref, targets_ref, loss_ref, *, q):
    # logits_ref: (T, C) in the input dtype; targets_ref: (T, 1) int32; loss_ref: (T, 1) f32
    logits = logits_ref[...].astype(jnp.float32)                 # upcast in-kernel (bf16 ok)
    tgt = targets_ref[...]                                       # (T, 1) int32

    # Numerically stable log-softmax pieces (all row-local; safe for padded tail rows).
    m = jnp.max(logits, axis=1, keepdims=True)                   # (T, 1)
    shifted = logits - m                                         # (T, C)
    sumexp = jnp.sum(jnp.exp(shifted), axis=1, keepdims=True)    # (T, 1)
    log_denom = jnp.log(sumexp)                                  # (T, 1)

    # Gather the target-class logit with an iota/one-hot lane select + lane reduction
    # (no data-dependent gather needed on the VPU/XLU path).
    class_ids = lax.broadcasted_iota(jnp.int32, logits.shape, 1)  # (T, C)
    onehot = class_ids == tgt                                     # (T, C) bool
    shifted_y = jnp.sum(jnp.where(onehot, shifted, 0.0), axis=1, keepdims=True)  # (T, 1)

    log_p_y = shifted_y - log_denom                               # log softmax at target
    ce = -log_p_y                                                 # per-sample cross entropy
    # loss_weight = p_y**q * q == exp(q * log_p_y) * q   (detached in torch; fwd identical)
    loss_weight = jnp.exp(q * log_p_y) * q

    loss_ref[...] = (ce * loss_weight).astype(loss_ref.dtype)


def generalized_ce_loss(logits, targets, q=0.7, row_tile=None, vmem_limit_bytes=None):
    """logits: (N, C) float (f32 or bf16); targets: (N,) int. Returns per-sample loss (N,) f32."""
    N, C = logits.shape
    if row_tile is None:
        row_tile = _pick_row_tile(N, C)
    targets_col = targets.astype(jnp.int32).reshape(N, 1)

    if vmem_limit_bytes is None:
        # Raise v5e's 16 MiB scoped default; equals the v6e/v7x defaults and stays well
        # under v7x's 64 MiB physical VMEM so double-buffering survives everywhere.
        vmem_limit_bytes = 32 * 1024 * 1024

    grid = (pl.cdiv(N, row_tile),)   # ragged tail handled by partial blocks (masked DMAs)

    kernel = functools.partial(_gce_kernel, q=q)
    out = pl.pallas_call(
        kernel,
        out_shape=jax.ShapeDtypeStruct((N, 1), jnp.float32),
        grid_spec=pltpu.PrefetchScalarGridSpec(
            num_scalar_prefetch=0,
            grid=grid,
            in_specs=[
                pl.BlockSpec((row_tile, C), lambda i: (i, 0)),
                pl.BlockSpec((row_tile, 1), lambda i: (i, 0)),
            ],
            out_specs=pl.BlockSpec((row_tile, 1), lambda i: (i, 0)),
        ),
        compiler_params=pltpu.CompilerParams(
            dimension_semantics=("parallel",),      # shards row blocks across v7x's 2 TCs
            vmem_limit_bytes=vmem_limit_bytes,
        ),
    )(logits, targets_col)
    return out.reshape(N)


def _reference(logits, targets, q=0.7):
    logits = logits.astype(jnp.float32)
    logp = jax.nn.log_softmax(logits, axis=1)
    log_p_y = jnp.take_along_axis(logp, targets[:, None].astype(jnp.int32), axis=1)[:, 0]
    p_y = jnp.exp(log_p_y)
    return (-log_p_y) * (p_y ** q) * q


if __name__ == "__main__":
    key = jax.random.PRNGKey(0)

    # Case 1: tiny single-block case (block shape == full array shape).
    k1, k2 = jax.random.split(key)
    N1, C1 = 8, 16
    logits1 = jax.random.normal(k1, (N1, C1), dtype=jnp.float32)
    targets1 = jax.random.randint(k2, (N1,), 0, C1, dtype=jnp.int32)
    loss1 = generalized_ce_loss(logits1, targets1, q=0.7)
    jax.block_until_ready(loss1)
    ref1 = _reference(logits1, targets1, q=0.7)
    assert loss1.shape == (N1,)
    assert jnp.allclose(loss1, ref1, atol=1e-5, rtol=1e-5), (loss1, ref1)

    # Case 2: multi-step grid with a ragged tail (N not a multiple of row_tile).
    k3, k4 = jax.random.split(k2)
    N2, C2 = 200, 128
    logits2 = jax.random.normal(k3, (N2, C2), dtype=jnp.float32)
    targets2 = jax.random.randint(k4, (N2,), 0, C2, dtype=jnp.int32)
    loss2 = generalized_ce_loss(logits2, targets2, q=0.7, row_tile=64)
    jax.block_until_ready(loss2)
    ref2 = _reference(logits2, targets2, q=0.7)
    assert loss2.shape == (N2,)
    assert jnp.allclose(loss2, ref2, atol=1e-5, rtol=1e-5), (loss2, ref2)

    # Case 3: bf16 logits streamed as-is from HBM (half the read bytes), f32 math in-kernel.
    k5, k6 = jax.random.split(k4)
    N3, C3 = 64, 128
    logits3 = jax.random.normal(k5, (N3, C3), dtype=jnp.float32).astype(jnp.bfloat16)
    targets3 = jax.random.randint(k6, (N3,), 0, C3, dtype=jnp.int32)
    loss3 = generalized_ce_loss(logits3, targets3, q=0.7)
    jax.block_until_ready(loss3)
    ref3 = _reference(logits3.astype(jnp.float32), targets3, q=0.7)
    assert loss3.shape == (N3,)
    assert jnp.allclose(loss3, ref3, atol=1e-5, rtol=1e-5), (loss3, ref3)

    print("KERNEL_OK")
</pallas_src>

<mosaic_0001>
module attributes {stable_mosaic.version = 11 : i64} {
  func.func @_gce_kernel(%arg0: i32, %arg1: memref<8x16xf32, #tpu.memory_space<vmem>>, %arg2: memref<8x1xi32, #tpu.memory_space<vmem>>, %arg3: memref<8x1xf32, #tpu.memory_space<vmem>>) attributes {dimension_semantics = [#tpu.dimension_semantics<parallel>], iteration_bounds = array<i64: 1>, scalar_prefetch = 0 : i64, scratch_operands = 0 : i64, tpu.core_type = #tpu.core_type<tc>, window_params = [{transform_indices = @transform_0, window_bounds = array<i64: 8, 16>}, {transform_indices = @transform_1, window_bounds = array<i64: 8, 1>}, {transform_indices = @transform_2, window_bounds = array<i64: 8, 1>}]} {
    %c0 = arith.constant 0 : index
    %c0_0 = arith.constant 0 : index
    %0 = vector.load %arg1[%c0, %c0_0] : memref<8x16xf32, #tpu.memory_space<vmem>>, vector<8x16xf32>
    %c0_1 = arith.constant 0 : index
    %c0_2 = arith.constant 0 : index
    %1 = vector.load %arg2[%c0_1, %c0_2] : memref<8x1xi32, #tpu.memory_space<vmem>>, vector<8x1xi32>
    %cst = arith.constant dense<0xFF800000> : vector<8xf32>
    %2 = vector.multi_reduction <maximumf>, %0, %cst [1] : vector<8x16xf32> to vector<8xf32>
    %3 = vector.shape_cast %2 : vector<8xf32> to vector<8x1xf32>
    %4 = vector.broadcast %3 : vector<8x1xf32> to vector<8x16xf32>
    %5 = arith.subf %0, %4 : vector<8x16xf32>
    %6 = math.exp %5 : vector<8x16xf32>
    %cst_3 = arith.constant dense<0.000000e+00> : vector<8xf32>
    %7 = vector.multi_reduction <add>, %6, %cst_3 [1] : vector<8x16xf32> to vector<8xf32>
    %8 = vector.shape_cast %7 : vector<8xf32> to vector<8x1xf32>
    %9 = math.log %8 : vector<8x1xf32>
    %10 = tpu.iota {dimensions = array<i32: 1>} : vector<8x16xi32>
    %11 = vector.broadcast %1 : vector<8x1xi32> to vector<8x16xi32>
    %12 = arith.cmpi eq, %10, %11 : vector<8x16xi32>
    %cst_4 = arith.constant 0.000000e+00 : f32
    %13 = vector.broadcast %cst_4 : f32 to vector<8x16xf32>
    %14 = arith.select %12, %5, %13 : vector<8x16xi1>, vector<8x16xf32>
    %cst_5 = arith.constant dense<0.000000e+00> : vector<8xf32>
    %15 = vector.multi_reduction <add>, %14, %cst_5 [1] : vector<8x16xf32> to vector<8xf32>
    %16 = vector.shape_cast %15 : vector<8xf32> to vector<8x1xf32>
    %17 = arith.subf %16, %9 : vector<8x1xf32>
    %cst_6 = arith.constant 0.000000e+00 : f32
    %18 = vector.broadcast %cst_6 : f32 to vector<8x1xf32>
    %19 = arith.subf %18, %17 : vector<8x1xf32>
    %cst_7 = arith.constant 0.699999988 : f32
    %20 = vector.broadcast %cst_7 : f32 to vector<8x1xf32>
    %21 = arith.mulf %20, %17 : vector<8x1xf32>
    %22 = math.exp %21 : vector<8x1xf32>
    %cst_8 = arith.constant 0.699999988 : f32
    %23 = vector.broadcast %cst_8 : f32 to vector<8x1xf32>
    %24 = arith.mulf %22, %23 : vector<8x1xf32>
    %25 = arith.mulf %19, %24 : vector<8x1xf32>
    %c0_9 = arith.constant 0 : index
    %c0_10 = arith.constant 0 : index
    %26 = vector.load %arg3[%c0_9, %c0_10] : memref<8x1xf32, #tpu.memory_space<vmem>>, vector<8x1xf32>
    tpu.vector_store %arg3[%c0_9, %c0_10], %25 {strides = array<i32>} : memref<8x1xf32, #tpu.memory_space<vmem>>, vector<8x1xf32>,
    return
  }
  func.func @transform_0(%arg0: i32) -> (i32, i32) {
    %c0_i32 = arith.constant 0 : i32
    %c0_i32_0 = arith.constant 0 : i32
    return %arg0, %c0_i32 : i32, i32
  }
  func.func @transform_1(%arg0: i32) -> (i32, i32) {
    %c0_i32 = arith.constant 0 : i32
    %c0_i32_0 = arith.constant 0 : i32
    return %arg0, %c0_i32 : i32, i32
  }
  func.func @transform_2(%arg0: i32) -> (i32, i32) {
    %c0_i32 = arith.constant 0 : i32
    %c0_i32_0 = arith.constant 0 : i32
    return %arg0, %c0_i32 : i32, i32
  }
}

</mosaic_0001>

<bundles_post_ra>
// kernel: tpu_custom_call.1
= control target key start
LH: loop header
LB: loop body
LE: loop exit
PB: predicated region body
PF: predicated region fallthrough
CT: control target
= control target key end

     0   :  { %vm13_vm0 = vcmask 130048   ;;  %v56_v1 = vmov 0   ;;  %v25_v7 = vlaneseq  ;;  %vm42_vm2 = vcmask 7168   ;;  %s84_s0 = inlined_call_operand.vmem [shape: f32[8,16], index: 0, kind: input, shape index: {}]   ;;  %s85_s1 = inlined_call_operand.vmem [shape: s32[8,1], index: 1, kind: input, shape index: {}]   ;;  %s86_s2 = inlined_call_operand.vmem [shape: f32[8,1], index: 2, kind: output, shape index: {}]  }
   0x1   :  { %v11_v0 = vld [vmem:[%s84_s0] sm:$0xff]  ;;  %49 = vset.pattern.permute.xlu0 %v56_v1 }
   0x2   :  { %v14_v2 = vsel %vm13_vm0, %v11_v0, -inf  ;;  %v12_v3 = vld [vmem:[%s85_s1] sm:$0xff]  ;;  %v26_v8 = vand.u32 127, %v25_v7 }
   0x3   :  { %15 = vmax.xlane.f32.xlu0 %v14_v2 }
  0x19   :  { %28 = vperm.xlu0 %49, %v12_v3  }
  0x8c   :  { %v16_v4 = vpop.xlane.xlu0 %15 }
  0x8d   :  { %v17_v5 = vsub.f32 %v11_v0, %v16_v4 }
  0x8f   :  { %v18_v6 = vmul.f32 1.442695, %v17_v5 }
  0x91   :  { %50 = vpow2.f32 %v18_v6 }
  0x94   :  { %v29_v9 = vpop.permute.xlu0 %28 }
  0x95   :  { %vm30_vm1 = vcmp.eq.s32.totalorder %v26_v8, %v29_v9 }
  0x96   :  { %v31_v12 = vsel %vm30_vm1, %v17_v5, 0.0 }
  0x97   :  { %v32_v13 = vsel %vm13_vm0, %v31_v12, 0.0 }
  0x9e   :  { %v51_v10 = vpop.eup %50 }
  0x9f   :  { %v20_v11 = vsel %vm13_vm0, %v51_v10, 0.0 }
  0xa0   :  { %21 = vadd.xlane.f32.xlu1 %v20_v11 }
  0xa4   :  { %33 = vadd.xlane.f32.xlu1 %v32_v13 }
 0x129   :  { %v22_v14 = vpop.xlane.xlu1 %21 }
 0x12a   :  { %52 = vlog2.f32 %v22_v14 }
 0x12d   :  { %v34_v17 = vpop.xlane.xlu1 %33 }
 0x137   :  { %v53_v15 = vpop.eup %52 }
 0x138   :  { %v24_v16 = vmul.f32 0.6931472, %v53_v15 }
 0x13a   :  { %v35_v18 = vsub.f32 %v34_v17, %v24_v16 }
 0x13c   :  { %v37_v19 = vmul.f32 0.7, %v35_v18  ;;  %v36_v22 = vsub.f32 0.0, %v35_v18 }
 0x13e   :  { %v38_v20 = vmul.f32 1.442695, %v37_v19 }
 0x140   :  { %54 = vpow2.f32 %v38_v20 }
 0x14d   :  { %v55_v21 = vpop.eup %54 }
 0x14e   :  { %v40_v23 = vmul.f32 0.7, %v55_v21 }
 0x150   :  { %v41_v24 = vmul.f32 %v40_v23, %v36_v22 }
 0x152   :  { %43 = vst.msk [vmem:[%s86_s2] sm:$0xff] %vm42_vm2, %v41_v24 }

</bundles_post_ra>
